<compile_context>
chip_gen: v7x
topology: tpu7x:2x2x1
jax: 0.10.0
libtpu: 0.0.40
codegen_flags: <defaults>
</compile_context>

<pallas_src>
import jax
import jax.numpy as jnp
from jax import lax
from jax.experimental import pallas as pl
from jax.experimental.pallas import tpu as pltpu

# LIFParameters defaults (norse)
TAU_SYN_INV = 1.0 / 5e-3   # 200.0
TAU_MEM_INV = 1.0 / 1e-2   # 100.0
V_LEAK = 0.0
V_TH = 1.0
V_RESET = 0.0
DT = 0.001

# Fused Euler-step constants (algebraically identical to the norse update):
#   v + dt*tmi*((v_leak - v) + i) = (1 - dt*tmi)*v + dt*tmi*i + dt*tmi*v_leak
#   i - dt*tsi*i                  = (1 - dt*tsi)*i
_A_V = 1.0 - DT * TAU_MEM_INV      # membrane decay
_B_V = DT * TAU_MEM_INV            # input / leak coupling
_C_I = 1.0 - DT * TAU_SYN_INV      # synaptic decay
_LEAK_TERM = _B_V * V_LEAK         # 0.0 for default params

_LANES = 128


def _lif_kernel(x_ref, z_ref, v_ref, i_ref):
    """x_ref/z_ref: (T, rows, 128) slab for one neuron tile; v_ref/i_ref: (rows, 128).

    The full time recurrence for this tile runs inside the kernel; state lives in
    the fori_loop carry (registers / VMEM) and is written once at the end.
    """
    T = x_ref.shape[0]
    state_shape = v_ref.shape

    v0 = jnp.full(state_shape, V_LEAK, dtype=jnp.float32)
    i0 = jnp.zeros(state_shape, dtype=jnp.float32)

    def step(t, carry):
        v, i = carry
        v_decayed = _A_V * v + _B_V * i + _LEAK_TERM
        i_decayed = _C_I * i
        spike = (v_decayed - V_TH) > 0.0               # norse heaviside: strict '>'
        z_ref[t] = spike.astype(z_ref.dtype)
        v_new = jnp.where(spike, jnp.float32(V_RESET), v_decayed)
        i_new = i_decayed + x_ref[t].astype(jnp.float32)
        return (v_new, i_new)

    # Unroll small time loops so the LLO scheduler sees the whole body.
    v, i = lax.fori_loop(0, T, step, (v0, i0), unroll=(T <= 16))
    v_ref[...] = v.astype(v_ref.dtype)
    i_ref[...] = i.astype(i_ref.dtype)


def _sublane_multiple(dtype):
    # f32 -> 8, bf16/f16 -> 16, int8/u8 -> 32 (packed sublane granularity)
    return max(8, 32 // jnp.dtype(dtype).itemsize)


def lif_feed_forward_layer(x, *, spike_dtype=None, max_block_bytes=4 << 20):
    """x: (T, B, N) float32. Returns (z: (T, B, N), v_final: (B, N), i_final: (B, N)).

    spike_dtype: dtype of the emitted spike tensor (default: x.dtype, like the
    PyTorch module). Pass jnp.int8 to cut spike HBM write traffic ~4x.
    """
    T, B, N = x.shape
    in_dtype = x.dtype
    z_dtype = jnp.dtype(in_dtype if spike_dtype is None else spike_dtype)

    M = B * N
    R = pl.cdiv(M, _LANES)                               # rows of 128 lanes
    row_mult = max(_sublane_multiple(jnp.float32), _sublane_multiple(z_dtype))

    # Per-grid-step x slab is (T, tile_rows, 128) f32; cap it at ~max_block_bytes
    # so the double-buffered x+z working set stays inside the scoped-VMEM default
    # on every generation (incl. v7x's 64 MiB physical / 32 MiB default).
    rows_budget = max(1, max_block_bytes // (T * _LANES * 4))
    tile_rows = max(row_mult, (min(rows_budget, R) // row_mult) * row_mult)
    R_pad = pl.cdiv(R, tile_rows) * tile_rows
    M_pad = R_pad * _LANES
    num_tiles = R_pad // tile_rows

    # Lane-dense layout: flatten (B, N) -> neurons, pad, fold into rows of 128.
    # Padded neurons see zero input and v_leak=0 < v_th, so they never spike.
    xf = x.reshape(T, M)
    if M_pad != M:
        xf = jnp.pad(xf, ((0, 0), (0, M_pad - M)))
    xf = xf.reshape(T, R_pad, _LANES)

    z, v, i = pl.pallas_call(
        _lif_kernel,
        out_shape=(
            jax.ShapeDtypeStruct((T, R_pad, _LANES), z_dtype),   # spikes over time
            jax.ShapeDtypeStruct((R_pad, _LANES), in_dtype),     # final v
            jax.ShapeDtypeStruct((R_pad, _LANES), in_dtype),     # final i
        ),
        grid_spec=pltpu.PrefetchScalarGridSpec(
            num_scalar_prefetch=0,
            grid=(num_tiles,),                                   # independent neuron tiles
            in_specs=[pl.BlockSpec((T, tile_rows, _LANES), lambda j: (0, j, 0))],
            out_specs=(
                pl.BlockSpec((T, tile_rows, _LANES), lambda j: (0, j, 0)),
                pl.BlockSpec((tile_rows, _LANES), lambda j: (j, 0)),
                pl.BlockSpec((tile_rows, _LANES), lambda j: (j, 0)),
            ),
        ),
        compiler_params=pltpu.CompilerParams(
            # Neuron tiles are embarrassingly parallel (time recurrence is fully
            # inside the kernel), so this shards across both TCs on v7x.
            dimension_semantics=("parallel",),
        ),
    )(xf)

    z = z.reshape(T, M_pad)[:, :M].reshape(T, B, N)
    v = v.reshape(M_pad)[:M].reshape(B, N)
    i = i.reshape(M_pad)[:M].reshape(B, N)
    return z, v, i


def _reference(x):
    """Pure-JAX reference mirroring norse lif_feed_forward_step semantics.

    Uses the same (algebraically identical) fused Euler constants as the kernel
    so the spike comparison is exact in f32.
    """
    T = x.shape[0]
    v = jnp.full(x.shape[1:], V_LEAK, dtype=jnp.float32)
    i = jnp.zeros(x.shape[1:], dtype=jnp.float32)
    zs = []
    for t in range(T):
        v_decayed = _A_V * v + _B_V * i + _LEAK_TERM
        i_decayed = _C_I * i
        z = ((v_decayed - V_TH) > 0.0).astype(x.dtype)
        v = jnp.where(z > 0, jnp.float32(V_RESET), v_decayed)
        i = i_decayed + x[t]
        zs.append(z)
    return jnp.stack(zs), v, i


if __name__ == "__main__":
    # 8 timesteps, 4 batches, 256 neurons -> B*N = 1024 = 8 x 128 (lane-dense tile)
    T, B, N = 8, 4, 256
    key = jax.random.PRNGKey(0)
    # Scale inputs so the membrane actually crosses threshold within a few steps.
    x = 12.0 * jax.random.normal(key, (T, B, N), dtype=jnp.float32)

    z, v_final, i_final = lif_feed_forward_layer(x)
    jax.block_until_ready((z, v_final, i_final))

    z_ref, v_ref, i_ref = _reference(x)
    assert z.shape == (T, B, N) and v_final.shape == (B, N) and i_final.shape == (B, N)
    assert jnp.array_equal(z, z_ref), "spike mismatch"
    assert jnp.allclose(v_final, v_ref, atol=1e-5), "v state mismatch"
    assert jnp.allclose(i_final, i_ref, atol=1e-5), "i state mismatch"

    # Narrow spike output (int8): same 0/1 values, ~4x less spike HBM write traffic.
    z_i8, v_i8, i_i8 = lif_feed_forward_layer(x, spike_dtype=jnp.int8)
    jax.block_until_ready((z_i8, v_i8, i_i8))
    assert jnp.array_equal(z_i8.astype(jnp.float32), z_ref), "int8 spike mismatch"
    assert jnp.allclose(v_i8, v_ref, atol=1e-5), "int8-run v state mismatch"

    print("KERNEL_OK")
</pallas_src>

<mosaic_0001>
module attributes {stable_mosaic.version = 11 : i64} {
  func.func @_lif_kernel(%arg0: i32, %arg1: memref<8x8x128xf32, #tpu.memory_space<vmem>>, %arg2: memref<8x8x128xf32, #tpu.memory_space<vmem>>, %arg3: memref<8x128xf32, #tpu.memory_space<vmem>>, %arg4: memref<8x128xf32, #tpu.memory_space<vmem>>) attributes {dimension_semantics = [#tpu.dimension_semantics<parallel>], iteration_bounds = array<i64: 1>, scalar_prefetch = 0 : i64, scratch_operands = 0 : i64, tpu.core_type = #tpu.core_type<tc>, window_params = [{transform_indices = @transform_0, window_bounds = array<i64: 8, 8, 128>}, {transform_indices = @transform_1, window_bounds = array<i64: 8, 8, 128>}, {transform_indices = @transform_2, window_bounds = array<i64: 8, 128>}, {transform_indices = @transform_3, window_bounds = array<i64: 8, 128>}]} {
    %cst = arith.constant 0.000000e+00 : f32
    %0 = vector.broadcast %cst : f32 to vector<8x128xf32>
    %cst_0 = arith.constant 0.000000e+00 : f32
    %1 = vector.broadcast %cst_0 : f32 to vector<8x128xf32>
    %c0_i32 = arith.constant 0 : i32
    %cst_1 = arith.constant 0.899999976 : f32
    %2 = vector.broadcast %cst_1 : f32 to vector<8x128xf32>
    %3 = arith.mulf %2, %0 : vector<8x128xf32>
    %cst_2 = arith.constant 1.000000e-01 : f32
    %4 = vector.broadcast %cst_2 : f32 to vector<8x128xf32>
    %5 = arith.mulf %4, %1 : vector<8x128xf32>
    %6 = arith.addf %3, %5 : vector<8x128xf32>
    %cst_3 = arith.constant 0.000000e+00 : f32
    %7 = vector.broadcast %cst_3 : f32 to vector<8x128xf32>
    %8 = arith.addf %6, %7 : vector<8x128xf32>
    %cst_4 = arith.constant 8.000000e-01 : f32
    %9 = vector.broadcast %cst_4 : f32 to vector<8x128xf32>
    %10 = arith.mulf %9, %1 : vector<8x128xf32>
    %cst_5 = arith.constant 1.000000e+00 : f32
    %11 = vector.broadcast %cst_5 : f32 to vector<8x128xf32>
    %12 = arith.subf %8, %11 : vector<8x128xf32>
    %cst_6 = arith.constant 0.000000e+00 : f32
    %13 = vector.broadcast %cst_6 : f32 to vector<8x128xf32>
    %14 = arith.cmpf ogt, %12, %13 : vector<8x128xf32>
    %15 = arith.extui %14 : vector<8x128xi1> to vector<8x128xi32>
    %16 = arith.sitofp %15 : vector<8x128xi32> to vector<8x128xf32>
    %17 = arith.index_cast %c0_i32 : i32 to index
    %c0 = arith.constant 0 : index
    %c0_7 = arith.constant 0 : index
    %18 = vector.load %arg2[%17, %c0, %c0_7] : memref<8x8x128xf32, #tpu.memory_space<vmem>>, vector<1x8x128xf32>
    %19 = vector.shape_cast %18 : vector<1x8x128xf32> to vector<8x128xf32>
    %20 = vector.shape_cast %16 : vector<8x128xf32> to vector<1x8x128xf32>
    tpu.vector_store %arg2[%17, %c0, %c0_7], %20 {strides = array<i32>} : memref<8x8x128xf32, #tpu.memory_space<vmem>>, vector<1x8x128xf32>,
    %cst_8 = arith.constant 0.000000e+00 : f32
    %21 = vector.broadcast %cst_8 : f32 to vector<8x128xf32>
    %22 = arith.select %14, %21, %8 : vector<8x128xi1>, vector<8x128xf32>
    %23 = arith.index_cast %c0_i32 : i32 to index
    %c0_9 = arith.constant 0 : index
    %c0_10 = arith.constant 0 : index
    %24 = vector.load %arg1[%23, %c0_9, %c0_10] : memref<8x8x128xf32, #tpu.memory_space<vmem>>, vector<1x8x128xf32>
    %25 = vector.shape_cast %24 : vector<1x8x128xf32> to vector<8x128xf32>
    %26 = arith.addf %10, %25 : vector<8x128xf32>
    %c1_i32 = arith.constant 1 : i32
    %cst_11 = arith.constant 0.899999976 : f32
    %27 = vector.broadcast %cst_11 : f32 to vector<8x128xf32>
    %28 = arith.mulf %27, %22 : vector<8x128xf32>
    %cst_12 = arith.constant 1.000000e-01 : f32
    %29 = vector.broadcast %cst_12 : f32 to vector<8x128xf32>
    %30 = arith.mulf %29, %26 : vector<8x128xf32>
    %31 = arith.addf %28, %30 : vector<8x128xf32>
    %cst_13 = arith.constant 0.000000e+00 : f32
    %32 = vector.broadcast %cst_13 : f32 to vector<8x128xf32>
    %33 = arith.addf %31, %32 : vector<8x128xf32>
    %cst_14 = arith.constant 8.000000e-01 : f32
    %34 = vector.broadcast %cst_14 : f32 to vector<8x128xf32>
    %35 = arith.mulf %34, %26 : vector<8x128xf32>
    %cst_15 = arith.constant 1.000000e+00 : f32
    %36 = vector.broadcast %cst_15 : f32 to vector<8x128xf32>
    %37 = arith.subf %33, %36 : vector<8x128xf32>
    %cst_16 = arith.constant 0.000000e+00 : f32
    %38 = vector.broadcast %cst_16 : f32 to vector<8x128xf32>
    %39 = arith.cmpf ogt, %37, %38 : vector<8x128xf32>
    %40 = arith.extui %39 : vector<8x128xi1> to vector<8x128xi32>
    %41 = arith.sitofp %40 : vector<8x128xi32> to vector<8x128xf32>
    %42 = arith.index_cast %c1_i32 : i32 to index
    %c0_17 = arith.constant 0 : index
    %c0_18 = arith.constant 0 : index
    %43 = vector.load %arg2[%42, %c0_17, %c0_18] : memref<8x8x128xf32, #tpu.memory_space<vmem>>, vector<1x8x128xf32>
    %44 = vector.shape_cast %43 : vector<1x8x128xf32> to vector<8x128xf32>
    %45 = vector.shape_cast %41 : vector<8x128xf32> to vector<1x8x128xf32>
    tpu.vector_store %arg2[%42, %c0_17, %c0_18], %45 {strides = array<i32>} : memref<8x8x128xf32, #tpu.memory_space<vmem>>, vector<1x8x128xf32>,
    %cst_19 = arith.constant 0.000000e+00 : f32
    %46 = vector.broadcast %cst_19 : f32 to vector<8x128xf32>
    %47 = arith.select %39, %46, %33 : vector<8x128xi1>, vector<8x128xf32>
    %48 = arith.index_cast %c1_i32 : i32 to index
    %c0_20 = arith.constant 0 : index
    %c0_21 = arith.constant 0 : index
    %49 = vector.load %arg1[%48, %c0_20, %c0_21] : memref<8x8x128xf32, #tpu.memory_space<vmem>>, vector<1x8x128xf32>
    %50 = vector.shape_cast %49 : vector<1x8x128xf32> to vector<8x128xf32>
    %51 = arith.addf %35, %50 : vector<8x128xf32>
    %c2_i32 = arith.constant 2 : i32
    %cst_22 = arith.constant 0.899999976 : f32
    %52 = vector.broadcast %cst_22 : f32 to vector<8x128xf32>
    %53 = arith.mulf %52, %47 : vector<8x128xf32>
    %cst_23 = arith.constant 1.000000e-01 : f32
    %54 = vector.broadcast %cst_23 : f32 to vector<8x128xf32>
    %55 = arith.mulf %54, %51 : vector<8x128xf32>
    %56 = arith.addf %53, %55 : vector<8x128xf32>
    %cst_24 = arith.constant 0.000000e+00 : f32
    %57 = vector.broadcast %cst_24 : f32 to vector<8x128xf32>
    %58 = arith.addf %56, %57 : vector<8x128xf32>
    %cst_25 = arith.constant 8.000000e-01 : f32
    %59 = vector.broadcast %cst_25 : f32 to vector<8x128xf32>
    %60 = arith.mulf %59, %51 : vector<8x128xf32>
    %cst_26 = arith.constant 1.000000e+00 : f32
    %61 = vector.broadcast %cst_26 : f32 to vector<8x128xf32>
    %62 = arith.subf %58, %61 : vector<8x128xf32>
    %cst_27 = arith.constant 0.000000e+00 : f32
    %63 = vector.broadcast %cst_27 : f32 to vector<8x128xf32>
    %64 = arith.cmpf ogt, %62, %63 : vector<8x128xf32>
    %65 = arith.extui %64 : vector<8x128xi1> to vector<8x128xi32>
    %66 = arith.sitofp %65 : vector<8x128xi32> to vector<8x128xf32>
    %67 = arith.index_cast %c2_i32 : i32 to index
    %c0_28 = arith.constant 0 : index
    %c0_29 = arith.constant 0 : index
    %68 = vector.load %arg2[%67, %c0_28, %c0_29] : memref<8x8x128xf32, #tpu.memory_space<vmem>>, vector<1x8x128xf32>
    %69 = vector.shape_cast %68 : vector<1x8x128xf32> to vector<8x128xf32>
    %70 = vector.shape_cast %66 : vector<8x128xf32> to vector<1x8x128xf32>
    tpu.vector_store %arg2[%67, %c0_28, %c0_29], %70 {strides = array<i32>} : memref<8x8x128xf32, #tpu.memory_space<vmem>>, vector<1x8x128xf32>,
    %cst_30 = arith.constant 0.000000e+00 : f32
    %71 = vector.broadcast %cst_30 : f32 to vector<8x128xf32>
    %72 = arith.select %64, %71, %58 : vector<8x128xi1>, vector<8x128xf32>
    %73 = arith.index_cast %c2_i32 : i32 to index
    %c0_31 = arith.constant 0 : index
    %c0_32 = arith.constant 0 : index
    %74 = vector.load %arg1[%73, %c0_31, %c0_32] : memref<8x8x128xf32, #tpu.memory_space<vmem>>, vector<1x8x128xf32>
    %75 = vector.shape_cast %74 : vector<1x8x128xf32> to vector<8x128xf32>
    %76 = arith.addf %60, %75 : vector<8x128xf32>
    %c3_i32 = arith.constant 3 : i32
    %cst_33 = arith.constant 0.899999976 : f32
    %77 = vector.broadcast %cst_33 : f32 to vector<8x128xf32>
    %78 = arith.mulf %77, %72 : vector<8x128xf32>
    %cst_34 = arith.constant 1.000000e-01 : f32
    %79 = vector.broadcast %cst_34 : f32 to vector<8x128xf32>
    %80 = arith.mulf %79, %76 : vector<8x128xf32>
    %81 = arith.addf %78, %80 : vector<8x128xf32>
    %cst_35 = arith.constant 0.000000e+00 : f32
    %82 = vector.broadcast %cst_35 : f32 to vector<8x128xf32>
    %83 = arith.addf %81, %82 : vector<8x128xf32>
    %cst_36 = arith.constant 8.000000e-01 : f32
    %84 = vector.broadcast %cst_36 : f32 to vector<8x128xf32>
    %85 = arith.mulf %84, %76 : vector<8x128xf32>
    %cst_37 = arith.constant 1.000000e+00 : f32
    %86 = vector.broadcast %cst_37 : f32 to vector<8x128xf32>
    %87 = arith.subf %83, %86 : vector<8x128xf32>
    %cst_38 = arith.constant 0.000000e+00 : f32
    %88 = vector.broadcast %cst_38 : f32 to vector<8x128xf32>
    %89 = arith.cmpf ogt, %87, %88 : vector<8x128xf32>
    %90 = arith.extui %89 : vector<8x128xi1> to vector<8x128xi32>
    %91 = arith.sitofp %90 : vector<8x128xi32> to vector<8x128xf32>
    %92 = arith.index_cast %c3_i32 : i32 to index
    %c0_39 = arith.constant 0 : index
    %c0_40 = arith.constant 0 : index
    %93 = vector.load %arg2[%92, %c0_39, %c0_40] : memref<8x8x128xf32, #tpu.memory_space<vmem>>, vector<1x8x128xf32>
    %94 = vector.shape_cast %93 : vector<1x8x128xf32> to vector<8x128xf32>
    %95 = vector.shape_cast %91 : vector<8x128xf32> to vector<1x8x128xf32>
    tpu.vector_store %arg2[%92, %c0_39, %c0_40], %95 {strides = array<i32>} : memref<8x8x128xf32, #tpu.memory_space<vmem>>, vector<1x8x128xf32>,
    %cst_41 = arith.constant 0.000000e+00 : f32
    %96 = vector.broadcast %cst_41 : f32 to vector<8x128xf32>
    %97 = arith.select %89, %96, %83 : vector<8x128xi1>, vector<8x128xf32>
    %98 = arith.index_cast %c3_i32 : i32 to index
    %c0_42 = arith.constant 0 : index
    %c0_43 = arith.constant 0 : index
    %99 = vector.load %arg1[%98, %c0_42, %c0_43] : memref<8x8x128xf32, #tpu.memory_space<vmem>>, vector<1x8x128xf32>
    %100 = vector.shape_cast %99 : vector<1x8x128xf32> to vector<8x128xf32>
    %101 = arith.addf %85, %100 : vector<8x128xf32>
    %c4_i32 = arith.constant 4 : i32
    %cst_44 = arith.constant 0.899999976 : f32
    %102 = vector.broadcast %cst_44 : f32 to vector<8x128xf32>
    %103 = arith.mulf %102, %97 : vector<8x128xf32>
    %cst_45 = arith.constant 1.000000e-01 : f32
    %104 = vector.broadcast %cst_45 : f32 to vector<8x128xf32>
    %105 = arith.mulf %104, %101 : vector<8x128xf32>
    %106 = arith.addf %103, %105 : vector<8x128xf32>
    %cst_46 = arith.constant 0.000000e+00 : f32
    %107 = vector.broadcast %cst_46 : f32 to vector<8x128xf32>
    %108 = arith.addf %106, %107 : vector<8x128xf32>
    %cst_47 = arith.constant 8.000000e-01 : f32
    %109 = vector.broadcast %cst_47 : f32 to vector<8x128xf32>
    %110 = arith.mulf %109, %101 : vector<8x128xf32>
    %cst_48 = arith.constant 1.000000e+00 : f32
    %111 = vector.broadcast %cst_48 : f32 to vector<8x128xf32>
    %112 = arith.subf %108, %111 : vector<8x128xf32>
    %cst_49 = arith.constant 0.000000e+00 : f32
    %113 = vector.broadcast %cst_49 : f32 to vector<8x128xf32>
    %114 = arith.cmpf ogt, %112, %113 : vector<8x128xf32>
    %115 = arith.extui %114 : vector<8x128xi1> to vector<8x128xi32>
    %116 = arith.sitofp %115 : vector<8x128xi32> to vector<8x128xf32>
    %117 = arith.index_cast %c4_i32 : i32 to index
    %c0_50 = arith.constant 0 : index
    %c0_51 = arith.constant 0 : index
    %118 = vector.load %arg2[%117, %c0_50, %c0_51] : memref<8x8x128xf32, #tpu.memory_space<vmem>>, vector<1x8x128xf32>
    %119 = vector.shape_cast %118 : vector<1x8x128xf32> to vector<8x128xf32>
    %120 = vector.shape_cast %116 : vector<8x128xf32> to vector<1x8x128xf32>
    tpu.vector_store %arg2[%117, %c0_50, %c0_51], %120 {strides = array<i32>} : memref<8x8x128xf32, #tpu.memory_space<vmem>>, vector<1x8x128xf32>,
    %cst_52 = arith.constant 0.000000e+00 : f32
    %121 = vector.broadcast %cst_52 : f32 to vector<8x128xf32>
    %122 = arith.select %114, %121, %108 : vector<8x128xi1>, vector<8x128xf32>
    %123 = arith.index_cast %c4_i32 : i32 to index
    %c0_53 = arith.constant 0 : index
    %c0_54 = arith.constant 0 : index
    %124 = vector.load %arg1[%123, %c0_53, %c0_54] : memref<8x8x128xf32, #tpu.memory_space<vmem>>, vector<1x8x128xf32>
    %125 = vector.shape_cast %124 : vector<1x8x128xf32> to vector<8x128xf32>
    %126 = arith.addf %110, %125 : vector<8x128xf32>
    %c5_i32 = arith.constant 5 : i32
    %cst_55 = arith.constant 0.899999976 : f32
    %127 = vector.broadcast %cst_55 : f32 to vector<8x128xf32>
    %128 = arith.mulf %127, %122 : vector<8x128xf32>
    %cst_56 = arith.constant 1.000000e-01 : f32
    %129 = vector.broadcast %cst_56 : f32 to vector<8x128xf32>
    %130 = arith.mulf %129, %126 : vector<8x128xf32>
    %131 = arith.addf %128, %130 : vector<8x128xf32>
    %cst_57 = arith.constant 0.000000e+00 : f32
    %132 = vector.broadcast %cst_57 : f32 to vector<8x128xf32>
    %133 = arith.addf %131, %132 : vector<8x128xf32>
    %cst_58 = arith.constant 8.000000e-01 : f32
    %134 = vector.broadcast %cst_58 : f32 to vector<8x128xf32>
    %135 = arith.mulf %134, %126 : vector<8x128xf32>
    %cst_59 = arith.constant 1.000000e+00 : f32
    %136 = vector.broadcast %cst_59 : f32 to vector<8x128xf32>
    %137 = arith.subf %133, %136 : vector<8x128xf32>
    %cst_60 = arith.constant 0.000000e+00 : f32
    %138 = vector.broadcast %cst_60 : f32 to vector<8x128xf32>
    %139 = arith.cmpf ogt, %137, %138 : vector<8x128xf32>
    %140 = arith.extui %139 : vector<8x128xi1> to vector<8x128xi32>
    %141 = arith.sitofp %140 : vector<8x128xi32> to vector<8x128xf32>
    %142 = arith.index_cast %c5_i32 : i32 to index
    %c0_61 = arith.constant 0 : index
    %c0_62 = arith.constant 0 : index
    %143 = vector.load %arg2[%142, %c0_61, %c0_62] : memref<8x8x128xf32, #tpu.memory_space<vmem>>, vector<1x8x128xf32>
    %144 = vector.shape_cast %143 : vector<1x8x128xf32> to vector<8x128xf32>
    %145 = vector.shape_cast %141 : vector<8x128xf32> to vector<1x8x128xf32>
    tpu.vector_store %arg2[%142, %c0_61, %c0_62], %145 {strides = array<i32>} : memref<8x8x128xf32, #tpu.memory_space<vmem>>, vector<1x8x128xf32>,
    %cst_63 = arith.constant 0.000000e+00 : f32
    %146 = vector.broadcast %cst_63 : f32 to vector<8x128xf32>
    %147 = arith.select %139, %146, %133 : vector<8x128xi1>, vector<8x128xf32>
    %148 = arith.index_cast %c5_i32 : i32 to index
    %c0_64 = arith.constant 0 : index
    %c0_65 = arith.constant 0 : index
    %149 = vector.load %arg1[%148, %c0_64, %c0_65] : memref<8x8x128xf32, #tpu.memory_space<vmem>>, vector<1x8x128xf32>
    %150 = vector.shape_cast %149 : vector<1x8x128xf32> to vector<8x128xf32>
    %151 = arith.addf %135, %150 : vector<8x128xf32>
    %c6_i32 = arith.constant 6 : i32
    %cst_66 = arith.constant 0.899999976 : f32
    %152 = vector.broadcast %cst_66 : f32 to vector<8x128xf32>
    %153 = arith.mulf %152, %147 : vector<8x128xf32>
    %cst_67 = arith.constant 1.000000e-01 : f32
    %154 = vector.broadcast %cst_67 : f32 to vector<8x128xf32>
    %155 = arith.mulf %154, %151 : vector<8x128xf32>
    %156 = arith.addf %153, %155 : vector<8x128xf32>
    %cst_68 = arith.constant 0.000000e+00 : f32
    %157 = vector.broadcast %cst_68 : f32 to vector<8x128xf32>
    %158 = arith.addf %156, %157 : vector<8x128xf32>
    %cst_69 = arith.constant 8.000000e-01 : f32
    %159 = vector.broadcast %cst_69 : f32 to vector<8x128xf32>
    %160 = arith.mulf %159, %151 : vector<8x128xf32>
    %cst_70 = arith.constant 1.000000e+00 : f32
    %161 = vector.broadcast %cst_70 : f32 to vector<8x128xf32>
    %162 = arith.subf %158, %161 : vector<8x128xf32>
    %cst_71 = arith.constant 0.000000e+00 : f32
    %163 = vector.broadcast %cst_71 : f32 to vector<8x128xf32>
    %164 = arith.cmpf ogt, %162, %163 : vector<8x128xf32>
    %165 = arith.extui %164 : vector<8x128xi1> to vector<8x128xi32>
    %166 = arith.sitofp %165 : vector<8x128xi32> to vector<8x128xf32>
    %167 = arith.index_cast %c6_i32 : i32 to index
    %c0_72 = arith.constant 0 : index
    %c0_73 = arith.constant 0 : index
    %168 = vector.load %arg2[%167, %c0_72, %c0_73] : memref<8x8x128xf32, #tpu.memory_space<vmem>>, vector<1x8x128xf32>
    %169 = vector.shape_cast %168 : vector<1x8x128xf32> to vector<8x128xf32>
    %170 = vector.shape_cast %166 : vector<8x128xf32> to vector<1x8x128xf32>
    tpu.vector_store %arg2[%167, %c0_72, %c0_73], %170 {strides = array<i32>} : memref<8x8x128xf32, #tpu.memory_space<vmem>>, vector<1x8x128xf32>,
    %cst_74 = arith.constant 0.000000e+00 : f32
    %171 = vector.broadcast %cst_74 : f32 to vector<8x128xf32>
    %172 = arith.select %164, %171, %158 : vector<8x128xi1>, vector<8x128xf32>
    %173 = arith.index_cast %c6_i32 : i32 to index
    %c0_75 = arith.constant 0 : index
    %c0_76 = arith.constant 0 : index
    %174 = vector.load %arg1[%173, %c0_75, %c0_76] : memref<8x8x128xf32, #tpu.memory_space<vmem>>, vector<1x8x128xf32>
    %175 = vector.shape_cast %174 : vector<1x8x128xf32> to vector<8x128xf32>
    %176 = arith.addf %160, %175 : vector<8x128xf32>
    %c7_i32 = arith.constant 7 : i32
    %cst_77 = arith.constant 0.899999976 : f32
    %177 = vector.broadcast %cst_77 : f32 to vector<8x128xf32>
    %178 = arith.mulf %177, %172 : vector<8x128xf32>
    %cst_78 = arith.constant 1.000000e-01 : f32
    %179 = vector.broadcast %cst_78 : f32 to vector<8x128xf32>
    %180 = arith.mulf %179, %176 : vector<8x128xf32>
    %181 = arith.addf %178, %180 : vector<8x128xf32>
    %cst_79 = arith.constant 0.000000e+00 : f32
    %182 = vector.broadcast %cst_79 : f32 to vector<8x128xf32>
    %183 = arith.addf %181, %182 : vector<8x128xf32>
    %cst_80 = arith.constant 8.000000e-01 : f32
    %184 = vector.broadcast %cst_80 : f32 to vector<8x128xf32>
    %185 = arith.mulf %184, %176 : vector<8x128xf32>
    %cst_81 = arith.constant 1.000000e+00 : f32
    %186 = vector.broadcast %cst_81 : f32 to vector<8x128xf32>
    %187 = arith.subf %183, %186 : vector<8x128xf32>
    %cst_82 = arith.constant 0.000000e+00 : f32
    %188 = vector.broadcast %cst_82 : f32 to vector<8x128xf32>
    %189 = arith.cmpf ogt, %187, %188 : vector<8x128xf32>
    %190 = arith.extui %189 : vector<8x128xi1> to vector<8x128xi32>
    %191 = arith.sitofp %190 : vector<8x128xi32> to vector<8x128xf32>
    %192 = arith.index_cast %c7_i32 : i32 to index
    %c0_83 = arith.constant 0 : index
    %c0_84 = arith.constant 0 : index
    %193 = vector.load %arg2[%192, %c0_83, %c0_84] : memref<8x8x128xf32, #tpu.memory_space<vmem>>, vector<1x8x128xf32>
    %194 = vector.shape_cast %193 : vector<1x8x128xf32> to vector<8x128xf32>
    %195 = vector.shape_cast %191 : vector<8x128xf32> to vector<1x8x128xf32>
    tpu.vector_store %arg2[%192, %c0_83, %c0_84], %195 {strides = array<i32>} : memref<8x8x128xf32, #tpu.memory_space<vmem>>, vector<1x8x128xf32>,
    %cst_85 = arith.constant 0.000000e+00 : f32
    %196 = vector.broadcast %cst_85 : f32 to vector<8x128xf32>
    %197 = arith.select %189, %196, %183 : vector<8x128xi1>, vector<8x128xf32>
    %198 = arith.index_cast %c7_i32 : i32 to index
    %c0_86 = arith.constant 0 : index
    %c0_87 = arith.constant 0 : index
    %199 = vector.load %arg1[%198, %c0_86, %c0_87] : memref<8x8x128xf32, #tpu.memory_space<vmem>>, vector<1x8x128xf32>
    %200 = vector.shape_cast %199 : vector<1x8x128xf32> to vector<8x128xf32>
    %201 = arith.addf %185, %200 : vector<8x128xf32>
    %c8_i32 = arith.constant 8 : i32
    %c0_88 = arith.constant 0 : index
    %c0_89 = arith.constant 0 : index
    %202 = vector.load %arg3[%c0_88, %c0_89] : memref<8x128xf32, #tpu.memory_space<vmem>>, vector<8x128xf32>
    tpu.vector_store %arg3[%c0_88, %c0_89], %197 {strides = array<i32>} : memref<8x128xf32, #tpu.memory_space<vmem>>, vector<8x128xf32>,
    %c0_90 = arith.constant 0 : index
    %c0_91 = arith.constant 0 : index
    %203 = vector.load %arg4[%c0_90, %c0_91] : memref<8x128xf32, #tpu.memory_space<vmem>>, vector<8x128xf32>
    tpu.vector_store %arg4[%c0_90, %c0_91], %201 {strides = array<i32>} : memref<8x128xf32, #tpu.memory_space<vmem>>, vector<8x128xf32>,
    return
  }
  func.func @transform_0(%arg0: i32) -> (i32, i32, i32) {
    %c0_i32 = arith.constant 0 : i32
    %c0_i32_0 = arith.constant 0 : i32
    %c0_i32_1 = arith.constant 0 : i32
    return %c0_i32, %arg0, %c0_i32_0 : i32, i32, i32
  }
  func.func @transform_1(%arg0: i32) -> (i32, i32, i32) {
    %c0_i32 = arith.constant 0 : i32
    %c0_i32_0 = arith.constant 0 : i32
    %c0_i32_1 = arith.constant 0 : i32
    return %c0_i32, %arg0, %c0_i32_0 : i32, i32, i32
  }
  func.func @transform_2(%arg0: i32) -> (i32, i32) {
    %c0_i32 = arith.constant 0 : i32
    %c0_i32_0 = arith.constant 0 : i32
    return %arg0, %c0_i32 : i32, i32
  }
  func.func @transform_3(%arg0: i32) -> (i32, i32) {
    %c0_i32 = arith.constant 0 : i32
    %c0_i32_0 = arith.constant 0 : i32
    return %arg0, %c0_i32 : i32, i32
  }
}

</mosaic_0001>

<bundles_post_ra>
// kernel: tpu_custom_call.1
= control target key start
LH: loop header
LB: loop body
LE: loop exit
PB: predicated region body
PF: predicated region fallthrough
CT: control target
= control target key end

     0   :  { %9 = vsyncpa [#allocation3], 0  ;;  %s401_s0 = inlined_call_operand.hbm [shape: f32[8,8,128], index: 0, kind: input, shape index: {}]   ;;  %s402_s1 = inlined_call_operand.hbm [shape: f32[8,8,128], index: 1, kind: output, shape index: {0}]   ;;  %s403_s2 = inlined_call_operand.hbm [shape: f32[8,128], index: 2, kind: output, shape index: {1}]   ;;  %s404_s3 = inlined_call_operand.hbm [shape: f32[8,128], index: 3, kind: output, shape index: {2}]  }
   0x1   :  { %10 = vsyncpa [#allocation4], 0 }
   0x2   :  { %11 = vsyncpa [#allocation7], 0  ;;  %s298_s12 = smov [#allocation2]   ;;  %s204_s16 = scalar_lea.hbm %s401_s0, 1024 }
   0x3   :  { %s17_s13 = sshll.u32 %s298_s12, 4  ;;  %p205_p0 = scmp.ne.s32.totalorder %s401_s0, %s204_s16  ;;  %s18_s13 = int_to_ptr.vmem [resolvable:$true] %s17_s13 }
   0x4   :  { %p208_p1 = scmp.lt.u32.totalorder %s204_s16, %s401_s0 }
   0x6   :  { %p210_p2 = pnand %p208_p1, %p205_p0 }
   0x8   :  { %213 = shalt.err (!%p210_p2)
}
   0x9   :  { %s214_s21 = scalar_lea.vmem %s18_s13, 1024  ;;  %p219_p4 = scmp.lt.s32.totalorder %s18_s13, %s18_s13 }
   0xa   :  { %p215_p3 = scmp.ne.s32.totalorder %s18_s13, %s214_s21  ;;  %p220_p5 = scmp.lt.s32.totalorder %s214_s21, %s214_s21 }
   0xc   :  { %p221_p6 = por %p220_p5, %p219_p4 }
   0xe   :  { %p222_p7 = pnand %p221_p6, %p215_p3 }
  0x10   :  { %225 = shalt.err (!%p222_p7)
}
  0x11   :  { %s299_s22 = smov 128   ;;  %s300_s23 = smov 8  }
  0x12   :  { %23 = dma.hbm_to_vmem [thread:$0]  %s401_s0, 1024, %s18_s13, [#allocation3], %s299_s22, %s299_s22, %s300_s23  }
  0x13   :  { %292 = dma.done.wait [#allocation3], 1024  }
  0x14   :  { %293 = vsyncadd [#allocation3], 4294966272  ;;  %v301_v0 = vmov 0.0   ;;  %v31_v1 = vld [vmem:[#allocation2] sm:$0xff]  ;;  %v45_v2 = vld [vmem:[#allocation2 + $0x8] sm:$0xff]  ;;  %s302_s0 = smov [#allocation6]  }
  0x15   :  { %30 = vst [vmem:[#allocation5] sm:$0xff] %v301_v0  ;;  %v33_v3 = vmul.f32 0.1, %v31_v1  ;;  %v36_v4 = vmul.f32 0.8, %v31_v1  ;;  %v60_v7 = vld [vmem:[#allocation2 + $0x10] sm:$0xff] }
  0x16   :  { %v75_v14 = vld [vmem:[#allocation2 + $0x18] sm:$0xff]  ;;  %v90_v19 = vld [vmem:[#allocation2 + $0x20] sm:$0xff]  ;;  %v105_v26 = vld [vmem:[#allocation2 + $0x28] sm:$0xff]  ;;  %s157_s26 = sshll.u32 %s302_s0, 4  ;;  %s303_s27 = smov [#allocation5]   ;;  %s158_s26 = int_to_ptr.vmem [resolvable:$true] %s157_s26 }
  0x17   :  { %v183_v5 = vadd.f32 -1.0, %v33_v3  ;;  %v46_v6 = vadd.f32 %v45_v2, %v36_v4  ;;  %v120_v31 = vld [vmem:[#allocation2 + $0x30] sm:$0xff]  ;;  %v135_v38 = vld [vmem:[#allocation2 + $0x38] sm:$0xff]  ;;  %s144_s28 = sshll.u32 %s303_s27, 4  ;;  %s304_s29 = smov [#allocation8]   ;;  %s348_s28 = int_to_ptr.vmem [resolvable:$true] %s144_s28 }
  0x18   :  { %s167_s30 = sshll.u32 %s304_s29, 4  ;;  %s226_s4 = scalar_lea.vmem %s158_s26, 128  ;;  %s350_s30 = int_to_ptr.vmem [resolvable:$true] %s167_s30 }
  0x19   :  { %vm38_vm0 = vcmp.gt.f32.partialorder %v183_v5, 0.0  ;;  %v48_v8 = vmul.f32 0.1, %v46_v6  ;;  %v51_v9 = vmul.f32 0.8, %v46_v6  ;;  %p227_p8 = scmp.ne.s32.totalorder %s158_s26, %s226_s4  ;;  %p231_p9 = scmp.lt.s32.totalorder %s158_s26, %s158_s26 }
  0x1a   :  { %v43_v10 = vsel %vm38_vm0, 0.0, %v33_v3  ;;  %v184_v11 = vsel %vm38_vm0, 1.0, %v301_v0  ;;  %p232_p10 = scmp.lt.s32.totalorder %s226_s4, %s226_s4 }
  0x1b   :  { %v47_v12 = vmul.f32 0.9, %v43_v10  ;;  %v61_v13 = vadd.f32 %v60_v7, %v51_v9  ;;  %42 = vst [vmem:[#allocation5 + $0x8] sm:$0xff] %v184_v11 }
  0x1c   :  { %p233_p11 = por %p232_p10, %p231_p9 }
  0x1d   :  { %v49_v15 = vadd.f32 %v48_v8, %v47_v12  ;;  %v66_v16 = vmul.f32 0.8, %v61_v13  ;;  %v63_v20 = vmul.f32 0.1, %v61_v13 }
  0x1e   :  { %p234_p12 = pnand %p233_p11, %p227_p8 }
  0x1f   :  { %v185_v17 = vadd.f32 -1.0, %v49_v15  ;;  %v76_v18 = vadd.f32 %v75_v14, %v66_v16 }
  0x21   :  { %vm53_vm1 = vcmp.gt.f32.partialorder %v185_v17, 0.0  ;;  %v81_v21 = vmul.f32 0.8, %v76_v18  ;;  %v78_v32 = vmul.f32 0.1, %v76_v18 }
  0x22   :  { %v58_v22 = vsel %vm53_vm1, 0.0, %v49_v15  ;;  %v186_v23 = vsel %vm53_vm1, 1.0, %v301_v0 }
  0x23   :  { %v62_v24 = vmul.f32 0.9, %v58_v22  ;;  %v91_v25 = vadd.f32 %v90_v19, %v81_v21  ;;  %57 = vst [vmem:[#allocation5 + $0x10] sm:$0xff] %v186_v23 }
  0x25   :  { %v64_v27 = vadd.f32 %v63_v20, %v62_v24  ;;  %v96_v28 = vmul.f32 0.8, %v91_v25  ;;  %v93_v43 = vmul.f32 0.1, %v91_v25 }
  0x27   :  { %v187_v29 = vadd.f32 -1.0, %v64_v27  ;;  %v106_v30 = vadd.f32 %v105_v26, %v96_v28 }
  0x29   :  { %vm68_vm2 = vcmp.gt.f32.partialorder %v187_v29, 0.0  ;;  %v111_v33 = vmul.f32 0.8, %v106_v30  ;;  %v108_v49 = vmul.f32 0.1, %v106_v30 }
  0x2a   :  { %v73_v34 = vsel %vm68_vm2, 0.0, %v64_v27  ;;  %v188_v35 = vsel %vm68_vm2, 1.0, %v301_v0 }
  0x2b   :  { %v77_v36 = vmul.f32 0.9, %v73_v34  ;;  %v121_v37 = vadd.f32 %v120_v31, %v111_v33  ;;  %72 = vst [vmem:[#allocation5 + $0x18] sm:$0xff] %v188_v35 }
  0x2d   :  { %v79_v39 = vadd.f32 %v78_v32, %v77_v36  ;;  %v126_v40 = vmul.f32 0.8, %v121_v37  ;;  %v123_v55 = vmul.f32 0.1, %v121_v37 }
  0x2f   :  { %v189_v41 = vadd.f32 -1.0, %v79_v39  ;;  %v136_v42 = vadd.f32 %v135_v38, %v126_v40 }
  0x31   :  { %vm83_vm3 = vcmp.gt.f32.partialorder %v189_v41, 0.0  ;;  %138 = vst [vmem:[#allocation8] sm:$0xff] %v136_v42 }
  0x32   :  { %v88_v44 = vsel %vm83_vm3, 0.0, %v79_v39  ;;  %v190_v45 = vsel %vm83_vm3, 1.0, %v301_v0 }
  0x33   :  { %v92_v46 = vmul.f32 0.9, %v88_v44  ;;  %87 = vst [vmem:[#allocation5 + $0x20] sm:$0xff] %v190_v45 }
  0x35   :  { %v94_v47 = vadd.f32 %v93_v43, %v92_v46 }
  0x37   :  { %v191_v48 = vadd.f32 -1.0, %v94_v47 }
  0x39   :  { %vm98_vm4 = vcmp.gt.f32.partialorder %v191_v48, 0.0 }
  0x3a   :  { %v103_v50 = vsel %vm98_vm4, 0.0, %v94_v47  ;;  %v192_v51 = vsel %vm98_vm4, 1.0, %v301_v0 }
  0x3b   :  { %v107_v52 = vmul.f32 0.9, %v103_v50  ;;  %102 = vst [vmem:[#allocation5 + $0x28] sm:$0xff] %v192_v51 }
  0x3d   :  { %v109_v53 = vadd.f32 %v108_v49, %v107_v52 }
  0x3f   :  { %v193_v54 = vadd.f32 -1.0, %v109_v53 }
  0x41   :  { %vm113_vm5 = vcmp.gt.f32.partialorder %v193_v54, 0.0 }
  0x42   :  { %v118_v56 = vsel %vm113_vm5, 0.0, %v109_v53  ;;  %v194_v57 = vsel %vm113_vm5, 1.0, %v301_v0 }
  0x43   :  { %v122_v58 = vmul.f32 0.9, %v118_v56  ;;  %117 = vst [vmem:[#allocation5 + $0x30] sm:$0xff] %v194_v57 }
  0x45   :  { %v124_v59 = vadd.f32 %v123_v55, %v122_v58 }
  0x47   :  { %v195_v60 = vadd.f32 -1.0, %v124_v59 }
  0x49   :  { %vm128_vm6 = vcmp.gt.f32.partialorder %v195_v60, 0.0 }
  0x4a   :  { %v133_v61 = vsel %vm128_vm6, 0.0, %v124_v59  ;;  %v196_v62 = vsel %vm128_vm6, 1.0, %v301_v0 }
  0x4b   :  { %137 = vst [vmem:[#allocation6] sm:$0xff] %v133_v61  ;;  %132 = vst [vmem:[#allocation5 + $0x38] sm:$0xff] %v196_v62 }
  0x4c   :  { %237 = shalt.err (!%p234_p12)
}
  0x4d   :  { %s238_s7 = scalar_lea.hbm %s403_s2, 128 }
  0x4e   :  { %p239_p13 = scmp.ne.s32.totalorder %s403_s2, %s238_s7  ;;  %p242_p0 = scmp.lt.u32.totalorder %s238_s7, %s403_s2 }
  0x50   :  { %p244_p1 = pnand %p242_p0, %p239_p13 }
  0x52   :  { %247 = shalt.err (!%p244_p1)
}
  0x53   :  { %160 = dma.vmem_to_hbm [thread:$0]  %s158_s26, 128, %s403_s2, [#allocation7]  }
  0x54   :  { %s248_s14 = scalar_lea.vmem %s348_s28, 1024  ;;  %p253_p3 = scmp.lt.s32.totalorder %s348_s28, %s348_s28 }
  0x55   :  { %p249_p2 = scmp.ne.s32.totalorder %s348_s28, %s248_s14  ;;  %p254_p4 = scmp.lt.s32.totalorder %s248_s14, %s248_s14 }
  0x57   :  { %p255_p5 = por %p254_p4, %p253_p3 }
  0x59   :  { %p256_p6 = pnand %p255_p5, %p249_p2 }
  0x5b   :  { %259 = shalt.err (!%p256_p6)
}
  0x5c   :  { %s260_s17 = scalar_lea.hbm %s402_s1, 1024 }
  0x5d   :  { %p261_p7 = scmp.ne.s32.totalorder %s402_s1, %s260_s17  ;;  %p264_p8 = scmp.lt.u32.totalorder %s260_s17, %s402_s1 }
  0x5f   :  { %p266_p9 = pnand %p264_p8, %p261_p7 }
  0x61   :  { %269 = shalt.err (!%p266_p9)
}
  0x62   :  { %150 = dma.vmem_to_hbm [thread:$0]  %s348_s28, 1024, %s402_s1, [#allocation4], %s299_s22, %s299_s22, %s300_s23  }
  0x63   :  { %s270_s25 = scalar_lea.vmem %s350_s30, 128  ;;  %p275_p11 = scmp.lt.s32.totalorder %s350_s30, %s350_s30 }
  0x64   :  { %p271_p10 = scmp.ne.s32.totalorder %s350_s30, %s270_s25  ;;  %p276_p12 = scmp.lt.s32.totalorder %s270_s25, %s270_s25 }
  0x66   :  { %p277_p13 = por %p276_p12, %p275_p11 }
  0x68   :  { %p278_p0 = pnand %p277_p13, %p271_p10 }
  0x6a   :  { %281 = shalt.err (!%p278_p0)
}
  0x6b   :  { %s282_s27 = scalar_lea.hbm %s404_s3, 128 }
  0x6c   :  { %p283_p1 = scmp.ne.s32.totalorder %s404_s3, %s282_s27  ;;  %p286_p2 = scmp.lt.u32.totalorder %s282_s27, %s404_s3 }
  0x6e   :  { %p288_p3 = pnand %p286_p2, %p283_p1 }
  0x70   :  { %291 = shalt.err (!%p288_p3)
}
  0x71   :  { %170 = dma.vmem_to_hbm [thread:$0]  %s350_s30, 128, %s404_s3, [#allocation7]  }
  0x72   :  { %294 = dma.done.wait [#allocation4], 1024  }
  0x73   :  { %295 = vsyncadd [#allocation4], 4294966272 }
  0x74   :  { %296 = dma.done.wait [#allocation7], 256  }
  0x75   :  { %297 = vsyncadd [#allocation7], 4294967040 }
  0x76   :  { %180 = vsyncpa [#allocation3], 1 }
  0x77   :  { %181 = vsyncpa [#allocation4], 1 }
  0x78   :  { %182 = vsyncpa [#allocation7], 1 }

</bundles_post_ra>
